<compile_context>
chip_gen: v5e
topology: v5e:2x2
jax: 0.10.0
libtpu: 0.0.40
codegen_flags: <defaults>
</compile_context>

<pallas_src>
import math

import jax
import jax.numpy as jnp
import numpy as np
from jax import lax
from jax.experimental import pallas as pl
from jax.experimental.pallas import tpu as pltpu

# Small shapes consistent with the module's forward (emb_dim divisible by n_heads).
BATCH = 2
SEQ = 8
EMB = 32
HEADS = 4
HEAD_DIM = EMB // HEADS
HIDDEN = 4 * EMB
EPS = 1e-5


def _layernorm(x, gamma, beta):
    mean = jnp.mean(x, axis=-1, keepdims=True)
    cent = x - mean
    var = jnp.mean(cent * cent, axis=-1, keepdims=True)   # unbiased=False
    return gamma * (cent * lax.rsqrt(var + EPS)) + beta


def _gelu_tanh(x):
    return 0.5 * x * (1.0 + jnp.tanh(jnp.sqrt(2.0 / jnp.pi) * (x + 0.044715 * x ** 3)))


def transformer_block_kernel(x_ref, mask_ref, ln1g_ref, ln1b_ref,
                             wqkv_ref, wo_ref, bo_ref,
                             ln2g_ref, ln2b_ref,
                             w1_ref, b1_ref, w2_ref, b2_ref,
                             o_ref):
    x = x_ref[0]                          # (T, D) f32, one batch element
    T, D = x.shape

    # ---- shortcut -> norm1 -> masked multi-head attention -> (dropout=id) -> +shortcut
    xn = _layernorm(x, ln1g_ref[...], ln1b_ref[...])

    # Fused QKV projection: one wide bf16 MXU matmul, f32 accumulation.
    # 1/sqrt(head_dim) is folded into the Q weight columns in prepare_params.
    qkv = jnp.dot(xn.astype(jnp.bfloat16), wqkv_ref[...],
                  preferred_element_type=jnp.float32)      # (T, 3D) f32
    q = qkv[:, :D]
    k = qkv[:, D:2 * D]
    v = qkv[:, 2 * D:]

    mask = mask_ref[...]                  # (T, T) additive causal bias (0 / -1e30)

    # Heads: static unrolled loop.  Each head's context goes straight into the
    # output-projection accumulator (no scratch, no narrow masked stores).
    attn = jnp.zeros((T, D), jnp.float32)
    for h in range(HEADS):
        sl = slice(h * HEAD_DIM, (h + 1) * HEAD_DIM)
        qh = q[:, sl].astype(jnp.bfloat16)
        kh = k[:, sl].astype(jnp.bfloat16)
        vh = v[:, sl].astype(jnp.bfloat16)
        # scores: contract head_dim of both operands (no materialized transpose)
        s = lax.dot_general(qh, kh, (((1,), (1,)), ((), ())),
                            preferred_element_type=jnp.float32) + mask   # (T, T) f32
        m = jnp.max(s, axis=-1, keepdims=True)
        e = jnp.exp(s - m)
        p = e * pl.reciprocal(jnp.sum(e, axis=-1, keepdims=True), approx=True)
        ctx_h = jnp.dot(p.astype(jnp.bfloat16), vh,
                        preferred_element_type=jnp.float32)              # (T, hd) f32
        attn = attn + jnp.dot(ctx_h.astype(jnp.bfloat16), wo_ref[h],
                              preferred_element_type=jnp.float32)        # (T, D) f32
    attn = attn + bo_ref[...]
    x1 = x + attn

    # ---- shortcut -> norm2 -> feed-forward (Linear, GELU, Linear) -> (dropout=id) -> +shortcut
    xn2 = _layernorm(x1, ln2g_ref[...], ln2b_ref[...])
    hdn = jnp.dot(xn2.astype(jnp.bfloat16), w1_ref[...],
                  preferred_element_type=jnp.float32) + b1_ref[...]
    hdn = _gelu_tanh(hdn)
    ff = jnp.dot(hdn.astype(jnp.bfloat16), w2_ref[...],
                 preferred_element_type=jnp.float32) + b2_ref[...]

    o_ref[0] = x1 + ff


def prepare_params(params):
    """One-time weight fusion / bf16 cast / mask build (NOT per forward call)."""
    (ln1g, ln1b, wq, wk, wv, wo, bo, ln2g, ln2b, w1, b1, w2, b2) = params
    scale = 1.0 / math.sqrt(HEAD_DIM)
    wqkv = jnp.concatenate([wq * scale, wk, wv], axis=1).astype(jnp.bfloat16)
    wo_b = wo.astype(jnp.bfloat16).reshape(HEADS, HEAD_DIM, EMB)   # per-head slabs
    w1_b = w1.astype(jnp.bfloat16)
    w2_b = w2.astype(jnp.bfloat16)
    rows = lax.broadcasted_iota(jnp.int32, (SEQ, SEQ), 0)
    cols = lax.broadcasted_iota(jnp.int32, (SEQ, SEQ), 1)
    mask = jnp.where(cols <= rows, 0.0, -1e30).astype(jnp.float32)  # additive bias
    return (ln1g, ln1b, wqkv, wo_b, bo, ln2g, ln2b, w1_b, b1, w2_b, b2, mask)


def transformer_block(x, prepared):
    B, T, D = x.shape
    (ln1g, ln1b, wqkv, wo_b, bo, ln2g, ln2b, w1_b, b1, w2_b, b2, mask) = prepared

    def fixed(shape):
        n = len(shape)
        return pl.BlockSpec(shape, lambda b, _n=n: (0,) * _n)

    flops = B * (2 * T * D * (3 * D)                         # fused QKV
                 + HEADS * 2 * (2 * T * T * HEAD_DIM)        # scores + p@v
                 + HEADS * 2 * T * HEAD_DIM * D              # per-head Wo accumulate
                 + 2 * 2 * T * D * HIDDEN)                   # FFN
    transcendentals = B * (HEADS * T * T + T * HIDDEN + 2 * T + HEADS * T)
    bytes_accessed = (2 * B * T * D) * 4 \
        + (wqkv.size + wo_b.size + w1_b.size + w2_b.size) * 2 \
        + (6 * D + HIDDEN + T * T) * 4

    out = pl.pallas_call(
        transformer_block_kernel,
        out_shape=jax.ShapeDtypeStruct((B, T, D), jnp.float32),
        grid_spec=pltpu.PrefetchScalarGridSpec(
            num_scalar_prefetch=0,
            grid=(B,),
            in_specs=[
                pl.BlockSpec((1, T, D), lambda b: (b, 0, 0)),   # x, per-batch tile
                fixed((T, T)),                                  # additive causal mask
                fixed((1, D)), fixed((1, D)),                   # ln1 gamma/beta
                fixed((D, 3 * D)),                              # fused Wqkv (bf16)
                fixed((HEADS, HEAD_DIM, D)),                    # Wo (bf16, per head)
                fixed((1, D)),                                  # bo
                fixed((1, D)), fixed((1, D)),                   # ln2 gamma/beta
                fixed((D, HIDDEN)), fixed((1, HIDDEN)),         # W1 (bf16), b1
                fixed((HIDDEN, D)), fixed((1, D)),              # W2 (bf16), b2
            ],
            out_specs=pl.BlockSpec((1, T, D), lambda b: (b, 0, 0)),
        ),
        compiler_params=pltpu.CompilerParams(
            dimension_semantics=("parallel",)),
        cost_estimate=pl.CostEstimate(
            flops=flops,
            transcendentals=transcendentals,
            bytes_accessed=bytes_accessed),
    )(x, mask, ln1g, ln1b, wqkv, wo_b, bo, ln2g, ln2b, w1_b, b1, w2_b, b2)

    return out


def init_params(key):
    ks = jax.random.split(key, 8)
    s = 0.02
    ln1g = jnp.ones((1, EMB), jnp.float32)
    ln1b = jnp.zeros((1, EMB), jnp.float32)
    ln2g = jnp.ones((1, EMB), jnp.float32)
    ln2b = jnp.zeros((1, EMB), jnp.float32)
    wq = s * jax.random.normal(ks[0], (EMB, EMB), jnp.float32)
    wk = s * jax.random.normal(ks[1], (EMB, EMB), jnp.float32)
    wv = s * jax.random.normal(ks[2], (EMB, EMB), jnp.float32)
    wo = s * jax.random.normal(ks[3], (EMB, EMB), jnp.float32)
    bo = s * jax.random.normal(ks[4], (1, EMB), jnp.float32)
    w1 = s * jax.random.normal(ks[5], (EMB, HIDDEN), jnp.float32)
    b1 = jnp.zeros((1, HIDDEN), jnp.float32)
    w2 = s * jax.random.normal(ks[6], (HIDDEN, EMB), jnp.float32)
    b2 = jnp.zeros((1, EMB), jnp.float32)
    return (ln1g, ln1b, wq, wk, wv, wo, bo, ln2g, ln2b, w1, b1, w2, b2)


def reference(x, params):
    (ln1g, ln1b, wq, wk, wv, wo, bo, ln2g, ln2b, w1, b1, w2, b2) = params

    def ln(x, g, b):
        m = x.mean(-1, keepdims=True)
        v = ((x - m) ** 2).mean(-1, keepdims=True)
        return g * ((x - m) / jnp.sqrt(v + EPS)) + b

    B, T, D = x.shape
    xn = ln(x, ln1g[0], ln1b[0])
    q = (xn @ wq).reshape(B, T, HEADS, HEAD_DIM).transpose(0, 2, 1, 3)
    k = (xn @ wk).reshape(B, T, HEADS, HEAD_DIM).transpose(0, 2, 1, 3)
    v = (xn @ wv).reshape(B, T, HEADS, HEAD_DIM).transpose(0, 2, 1, 3)
    s = jnp.einsum("bhqd,bhkd->bhqk", q, k) / math.sqrt(HEAD_DIM)
    mask = jnp.tril(jnp.ones((T, T), bool))
    s = jnp.where(mask, s, -1e30)
    p = jax.nn.softmax(s, axis=-1)
    ctx = jnp.einsum("bhqk,bhkd->bhqd", p, v).transpose(0, 2, 1, 3).reshape(B, T, D)
    x1 = x + (ctx @ wo + bo[0])
    xn2 = ln(x1, ln2g[0], ln2b[0])
    h = _gelu_tanh(xn2 @ w1 + b1[0])
    return x1 + (h @ w2 + b2[0])


if __name__ == "__main__":
    key = jax.random.PRNGKey(0)
    kx, kp = jax.random.split(key)
    x = jax.random.normal(kx, (BATCH, SEQ, EMB), jnp.float32)
    params = init_params(kp)
    prepared = prepare_params(params)       # one-time fuse/cast, not per call

    out = transformer_block(x, prepared)
    out = jax.block_until_ready(out)

    ref = reference(x, params)
    # bf16 MXU operands (f32 accumulation / f32 elementwise) -> looser tolerance.
    np.testing.assert_allclose(np.asarray(out), np.asarray(ref), rtol=1e-2, atol=1e-2)
    print("KERNEL_OK")
</pallas_src>

<mosaic_0001>
module attributes {stable_mosaic.version = 11 : i64} {
  func.func @transformer_block_kernel(%arg0: i32, %arg1: memref<1x8x32xf32, #tpu.memory_space<vmem>>, %arg2: memref<8x8xf32, #tpu.memory_space<vmem>>, %arg3: memref<1x32xf32, #tpu.memory_space<vmem>>, %arg4: memref<1x32xf32, #tpu.memory_space<vmem>>, %arg5: memref<32x96xbf16, #tpu.memory_space<vmem>>, %arg6: memref<4x8x32xbf16, #tpu.memory_space<vmem>>, %arg7: memref<1x32xf32, #tpu.memory_space<vmem>>, %arg8: memref<1x32xf32, #tpu.memory_space<vmem>>, %arg9: memref<1x32xf32, #tpu.memory_space<vmem>>, %arg10: memref<32x128xbf16, #tpu.memory_space<vmem>>, %arg11: memref<1x128xf32, #tpu.memory_space<vmem>>, %arg12: memref<128x32xbf16, #tpu.memory_space<vmem>>, %arg13: memref<1x32xf32, #tpu.memory_space<vmem>>, %arg14: memref<1x8x32xf32, #tpu.memory_space<vmem>>) attributes {dimension_semantics = [#tpu.dimension_semantics<parallel>], iteration_bounds = array<i64: 2>, scalar_prefetch = 0 : i64, scratch_operands = 0 : i64, tpu.core_type = #tpu.core_type<tc>, window_params = [{transform_indices = @transform_0, window_bounds = array<i64: 1, 8, 32>}, {pipeline_mode = #tpu.pipeline_mode<synchronous>, transform_indices = @transform_1, window_bounds = array<i64: 8, 8>}, {pipeline_mode = #tpu.pipeline_mode<synchronous>, transform_indices = @transform_2, window_bounds = array<i64: 1, 32>}, {pipeline_mode = #tpu.pipeline_mode<synchronous>, transform_indices = @transform_3, window_bounds = array<i64: 1, 32>}, {pipeline_mode = #tpu.pipeline_mode<synchronous>, transform_indices = @transform_4, window_bounds = array<i64: 32, 96>}, {pipeline_mode = #tpu.pipeline_mode<synchronous>, transform_indices = @transform_5, window_bounds = array<i64: 4, 8, 32>}, {pipeline_mode = #tpu.pipeline_mode<synchronous>, transform_indices = @transform_6, window_bounds = array<i64: 1, 32>}, {pipeline_mode = #tpu.pipeline_mode<synchronous>, transform_indices = @transform_7, window_bounds = array<i64: 1, 32>}, {pipeline_mode = #tpu.pipeline_mode<synchronous>, transform_indices = @transform_8, window_bounds = array<i64: 1, 32>}, {pipeline_mode = #tpu.pipeline_mode<synchronous>, transform_indices = @transform_9, window_bounds = array<i64: 32, 128>}, {pipeline_mode = #tpu.pipeline_mode<synchronous>, transform_indices = @transform_10, window_bounds = array<i64: 1, 128>}, {pipeline_mode = #tpu.pipeline_mode<synchronous>, transform_indices = @transform_11, window_bounds = array<i64: 128, 32>}, {pipeline_mode = #tpu.pipeline_mode<synchronous>, transform_indices = @transform_12, window_bounds = array<i64: 1, 32>}, {transform_indices = @transform_13, window_bounds = array<i64: 1, 8, 32>}]} {
    %c0 = arith.constant 0 : index
    %c0_0 = arith.constant 0 : index
    %c0_1 = arith.constant 0 : index
    %0 = vector.load %arg1[%c0, %c0_0, %c0_1] : memref<1x8x32xf32, #tpu.memory_space<vmem>>, vector<1x8x32xf32>
    %1 = vector.shape_cast %0 : vector<1x8x32xf32> to vector<8x32xf32>
    %c0_2 = arith.constant 0 : index
    %c0_3 = arith.constant 0 : index
    %2 = vector.load %arg3[%c0_2, %c0_3] : memref<1x32xf32, #tpu.memory_space<vmem>>, vector<1x32xf32>
    %c0_4 = arith.constant 0 : index
    %c0_5 = arith.constant 0 : index
    %3 = vector.load %arg4[%c0_4, %c0_5] : memref<1x32xf32, #tpu.memory_space<vmem>>, vector<1x32xf32>
    %cst = arith.constant dense<0.000000e+00> : vector<8xf32>
    %4 = vector.multi_reduction <add>, %1, %cst [1] : vector<8x32xf32> to vector<8xf32>
    %5 = vector.shape_cast %4 : vector<8xf32> to vector<8x1xf32>
    %cst_6 = arith.constant 3.200000e+01 : f32
    %6 = vector.broadcast %cst_6 : f32 to vector<8x1xf32>
    %7 = arith.divf %5, %6 : vector<8x1xf32>
    %8 = vector.broadcast %7 : vector<8x1xf32> to vector<8x32xf32>
    %9 = arith.subf %1, %8 : vector<8x32xf32>
    %10 = arith.mulf %9, %9 : vector<8x32xf32>
    %cst_7 = arith.constant dense<0.000000e+00> : vector<8xf32>
    %11 = vector.multi_reduction <add>, %10, %cst_7 [1] : vector<8x32xf32> to vector<8xf32>
    %12 = vector.shape_cast %11 : vector<8xf32> to vector<8x1xf32>
    %cst_8 = arith.constant 3.200000e+01 : f32
    %13 = vector.broadcast %cst_8 : f32 to vector<8x1xf32>
    %14 = arith.divf %12, %13 : vector<8x1xf32>
    %cst_9 = arith.constant 9.99999974E-6 : f32
    %15 = vector.broadcast %cst_9 : f32 to vector<8x1xf32>
    %16 = arith.addf %14, %15 : vector<8x1xf32>
    %17 = math.rsqrt %16 : vector<8x1xf32>
    %18 = vector.broadcast %17 : vector<8x1xf32> to vector<8x32xf32>
    %19 = arith.mulf %9, %18 : vector<8x32xf32>
    %20 = vector.broadcast %2 : vector<1x32xf32> to vector<8x32xf32>
    %21 = arith.mulf %20, %19 : vector<8x32xf32>
    %22 = vector.broadcast %3 : vector<1x32xf32> to vector<8x32xf32>
    %23 = arith.addf %21, %22 : vector<8x32xf32>
    %24 = arith.truncf %23 : vector<8x32xf32> to vector<8x32xbf16>
    %c0_10 = arith.constant 0 : index
    %c0_11 = arith.constant 0 : index
    %25 = vector.load %arg5[%c0_10, %c0_11] : memref<32x96xbf16, #tpu.memory_space<vmem>>, vector<32x96xbf16>
    %cst_12 = arith.constant dense<0.000000e+00> : vector<8x96xf32>
    %26 = tpu.matmul %24, %25, %cst_12 {dimension_numbers = #tpu.dot_dimension_numbers<[1], [0], [0], [1], [0, 0, 1, 1], [], []>} : vector<8x32xbf16>, vector<32x96xbf16>, vector<8x96xf32> -> vector<8x96xf32>
    %27 = vector.extract_strided_slice %26 {offsets = [0, 0], sizes = [8, 32], strides = [1, 1]} : vector<8x96xf32> to vector<8x32xf32>
    %28 = vector.extract_strided_slice %26 {offsets = [0, 32], sizes = [8, 32], strides = [1, 1]} : vector<8x96xf32> to vector<8x32xf32>
    %29 = vector.extract_strided_slice %26 {offsets = [0, 64], sizes = [8, 32], strides = [1, 1]} : vector<8x96xf32> to vector<8x32xf32>
    %c0_13 = arith.constant 0 : index
    %c0_14 = arith.constant 0 : index
    %30 = vector.load %arg2[%c0_13, %c0_14] : memref<8x8xf32, #tpu.memory_space<vmem>>, vector<8x8xf32>
    %cst_15 = arith.constant 0.000000e+00 : f32
    %31 = vector.broadcast %cst_15 : f32 to vector<8x32xf32>
    %32 = vector.extract_strided_slice %27 {offsets = [0, 0], sizes = [8, 8], strides = [1, 1]} : vector<8x32xf32> to vector<8x8xf32>
    %33 = arith.truncf %32 : vector<8x8xf32> to vector<8x8xbf16>
    %34 = vector.extract_strided_slice %28 {offsets = [0, 0], sizes = [8, 8], strides = [1, 1]} : vector<8x32xf32> to vector<8x8xf32>
    %35 = arith.truncf %34 : vector<8x8xf32> to vector<8x8xbf16>
    %36 = vector.extract_strided_slice %29 {offsets = [0, 0], sizes = [8, 8], strides = [1, 1]} : vector<8x32xf32> to vector<8x8xf32>
    %37 = arith.truncf %36 : vector<8x8xf32> to vector<8x8xbf16>
    %cst_16 = arith.constant dense<0.000000e+00> : vector<8x8xf32>
    %38 = tpu.matmul %33, %35, %cst_16 {dimension_numbers = #tpu.dot_dimension_numbers<[1], [1], [0], [0], [0, 0, 1, 0], [], []>} : vector<8x8xbf16>, vector<8x8xbf16>, vector<8x8xf32> -> vector<8x8xf32>
    %39 = arith.addf %38, %30 : vector<8x8xf32>
    %cst_17 = arith.constant dense<0xFF800000> : vector<8xf32>
    %40 = vector.multi_reduction <maximumf>, %39, %cst_17 [1] : vector<8x8xf32> to vector<8xf32>
    %41 = vector.shape_cast %40 : vector<8xf32> to vector<8x1xf32>
    %42 = vector.broadcast %41 : vector<8x1xf32> to vector<8x8xf32>
    %43 = arith.subf %39, %42 : vector<8x8xf32>
    %44 = math.exp %43 : vector<8x8xf32>
    %cst_18 = arith.constant dense<0.000000e+00> : vector<8xf32>
    %45 = vector.multi_reduction <add>, %44, %cst_18 [1] : vector<8x8xf32> to vector<8xf32>
    %46 = vector.shape_cast %45 : vector<8xf32> to vector<8x1xf32>
    %47 = tpu.reciprocal %46 {approx = true} : vector<8x1xf32> -> vector<8x1xf32>
    %48 = vector.broadcast %47 : vector<8x1xf32> to vector<8x8xf32>
    %49 = arith.mulf %44, %48 : vector<8x8xf32>
    %50 = arith.truncf %49 : vector<8x8xf32> to vector<8x8xbf16>
    %cst_19 = arith.constant dense<0.000000e+00> : vector<8x8xf32>
    %51 = tpu.matmul %50, %37, %cst_19 {dimension_numbers = #tpu.dot_dimension_numbers<[1], [0], [0], [1], [0, 0, 1, 1], [], []>} : vector<8x8xbf16>, vector<8x8xbf16>, vector<8x8xf32> -> vector<8x8xf32>
    %52 = arith.truncf %51 : vector<8x8xf32> to vector<8x8xbf16>
    %c0_20 = arith.constant 0 : index
    %c0_21 = arith.constant 0 : index
    %c0_22 = arith.constant 0 : index
    %53 = vector.load %arg6[%c0_20, %c0_21, %c0_22] : memref<4x8x32xbf16, #tpu.memory_space<vmem>>, vector<1x8x32xbf16>
    %54 = vector.shape_cast %53 : vector<1x8x32xbf16> to vector<8x32xbf16>
    %cst_23 = arith.constant dense<0.000000e+00> : vector<8x32xf32>
    %55 = tpu.matmul %52, %54, %cst_23 {dimension_numbers = #tpu.dot_dimension_numbers<[1], [0], [0], [1], [0, 0, 1, 1], [], []>} : vector<8x8xbf16>, vector<8x32xbf16>, vector<8x32xf32> -> vector<8x32xf32>
    %56 = arith.addf %31, %55 : vector<8x32xf32>
    %57 = vector.extract_strided_slice %27 {offsets = [0, 8], sizes = [8, 8], strides = [1, 1]} : vector<8x32xf32> to vector<8x8xf32>
    %58 = arith.truncf %57 : vector<8x8xf32> to vector<8x8xbf16>
    %59 = vector.extract_strided_slice %28 {offsets = [0, 8], sizes = [8, 8], strides = [1, 1]} : vector<8x32xf32> to vector<8x8xf32>
    %60 = arith.truncf %59 : vector<8x8xf32> to vector<8x8xbf16>
    %61 = vector.extract_strided_slice %29 {offsets = [0, 8], sizes = [8, 8], strides = [1, 1]} : vector<8x32xf32> to vector<8x8xf32>
    %62 = arith.truncf %61 : vector<8x8xf32> to vector<8x8xbf16>
    %cst_24 = arith.constant dense<0.000000e+00> : vector<8x8xf32>
    %63 = tpu.matmul %58, %60, %cst_24 {dimension_numbers = #tpu.dot_dimension_numbers<[1], [1], [0], [0], [0, 0, 1, 0], [], []>} : vector<8x8xbf16>, vector<8x8xbf16>, vector<8x8xf32> -> vector<8x8xf32>
    %64 = arith.addf %63, %30 : vector<8x8xf32>
    %cst_25 = arith.constant dense<0xFF800000> : vector<8xf32>
    %65 = vector.multi_reduction <maximumf>, %64, %cst_25 [1] : vector<8x8xf32> to vector<8xf32>
    %66 = vector.shape_cast %65 : vector<8xf32> to vector<8x1xf32>
    %67 = vector.broadcast %66 : vector<8x1xf32> to vector<8x8xf32>
    %68 = arith.subf %64, %67 : vector<8x8xf32>
    %69 = math.exp %68 : vector<8x8xf32>
    %cst_26 = arith.constant dense<0.000000e+00> : vector<8xf32>
    %70 = vector.multi_reduction <add>, %69, %cst_26 [1] : vector<8x8xf32> to vector<8xf32>
    %71 = vector.shape_cast %70 : vector<8xf32> to vector<8x1xf32>
    %72 = tpu.reciprocal %71 {approx = true} : vector<8x1xf32> -> vector<8x1xf32>
    %73 = vector.broadcast %72 : vector<8x1xf32> to vector<8x8xf32>
    %74 = arith.mulf %69, %73 : vector<8x8xf32>
    %75 = arith.truncf %74 : vector<8x8xf32> to vector<8x8xbf16>
    %cst_27 = arith.constant dense<0.000000e+00> : vector<8x8xf32>
    %76 = tpu.matmul %75, %62, %cst_27 {dimension_numbers = #tpu.dot_dimension_numbers<[1], [0], [0], [1], [0, 0, 1, 1], [], []>} : vector<8x8xbf16>, vector<8x8xbf16>, vector<8x8xf32> -> vector<8x8xf32>
    %77 = arith.truncf %76 : vector<8x8xf32> to vector<8x8xbf16>
    %c1 = arith.constant 1 : index
    %c0_28 = arith.constant 0 : index
    %c0_29 = arith.constant 0 : index
    %78 = vector.load %arg6[%c1, %c0_28, %c0_29] : memref<4x8x32xbf16, #tpu.memory_space<vmem>>, vector<1x8x32xbf16>
    %79 = vector.shape_cast %78 : vector<1x8x32xbf16> to vector<8x32xbf16>
    %cst_30 = arith.constant dense<0.000000e+00> : vector<8x32xf32>
    %80 = tpu.matmul %77, %79, %cst_30 {dimension_numbers = #tpu.dot_dimension_numbers<[1], [0], [0], [1], [0, 0, 1, 1], [], []>} : vector<8x8xbf16>, vector<8x32xbf16>, vector<8x32xf32> -> vector<8x32xf32>
    %81 = arith.addf %56, %80 : vector<8x32xf32>
    %82 = vector.extract_strided_slice %27 {offsets = [0, 16], sizes = [8, 8], strides = [1, 1]} : vector<8x32xf32> to vector<8x8xf32>
    %83 = arith.truncf %82 : vector<8x8xf32> to vector<8x8xbf16>
    %84 = vector.extract_strided_slice %28 {offsets = [0, 16], sizes = [8, 8], strides = [1, 1]} : vector<8x32xf32> to vector<8x8xf32>
    %85 = arith.truncf %84 : vector<8x8xf32> to vector<8x8xbf16>
    %86 = vector.extract_strided_slice %29 {offsets = [0, 16], sizes = [8, 8], strides = [1, 1]} : vector<8x32xf32> to vector<8x8xf32>
    %87 = arith.truncf %86 : vector<8x8xf32> to vector<8x8xbf16>
    %cst_31 = arith.constant dense<0.000000e+00> : vector<8x8xf32>
    %88 = tpu.matmul %83, %85, %cst_31 {dimension_numbers = #tpu.dot_dimension_numbers<[1], [1], [0], [0], [0, 0, 1, 0], [], []>} : vector<8x8xbf16>, vector<8x8xbf16>, vector<8x8xf32> -> vector<8x8xf32>
    %89 = arith.addf %88, %30 : vector<8x8xf32>
    %cst_32 = arith.constant dense<0xFF800000> : vector<8xf32>
    %90 = vector.multi_reduction <maximumf>, %89, %cst_32 [1] : vector<8x8xf32> to vector<8xf32>
    %91 = vector.shape_cast %90 : vector<8xf32> to vector<8x1xf32>
    %92 = vector.broadcast %91 : vector<8x1xf32> to vector<8x8xf32>
    %93 = arith.subf %89, %92 : vector<8x8xf32>
    %94 = math.exp %93 : vector<8x8xf32>
    %cst_33 = arith.constant dense<0.000000e+00> : vector<8xf32>
    %95 = vector.multi_reduction <add>, %94, %cst_33 [1] : vector<8x8xf32> to vector<8xf32>
    %96 = vector.shape_cast %95 : vector<8xf32> to vector<8x1xf32>
    %97 = tpu.reciprocal %96 {approx = true} : vector<8x1xf32> -> vector<8x1xf32>
    %98 = vector.broadcast %97 : vector<8x1xf32> to vector<8x8xf32>
    %99 = arith.mulf %94, %98 : vector<8x8xf32>
    %100 = arith.truncf %99 : vector<8x8xf32> to vector<8x8xbf16>
    %cst_34 = arith.constant dense<0.000000e+00> : vector<8x8xf32>
    %101 = tpu.matmul %100, %87, %cst_34 {dimension_numbers = #tpu.dot_dimension_numbers<[1], [0], [0], [1], [0, 0, 1, 1], [], []>} : vector<8x8xbf16>, vector<8x8xbf16>, vector<8x8xf32> -> vector<8x8xf32>
    %102 = arith.truncf %101 : vector<8x8xf32> to vector<8x8xbf16>
    %c2 = arith.constant 2 : index
    %c0_35 = arith.constant 0 : index
    %c0_36 = arith.constant 0 : index
    %103 = vector.load %arg6[%c2, %c0_35, %c0_36] : memref<4x8x32xbf16, #tpu.memory_space<vmem>>, vector<1x8x32xbf16>
    %104 = vector.shape_cast %103 : vector<1x8x32xbf16> to vector<8x32xbf16>
    %cst_37 = arith.constant dense<0.000000e+00> : vector<8x32xf32>
    %105 = tpu.matmul %102, %104, %cst_37 {dimension_numbers = #tpu.dot_dimension_numbers<[1], [0], [0], [1], [0, 0, 1, 1], [], []>} : vector<8x8xbf16>, vector<8x32xbf16>, vector<8x32xf32> -> vector<8x32xf32>
    %106 = arith.addf %81, %105 : vector<8x32xf32>
    %107 = vector.extract_strided_slice %27 {offsets = [0, 24], sizes = [8, 8], strides = [1, 1]} : vector<8x32xf32> to vector<8x8xf32>
    %108 = arith.truncf %107 : vector<8x8xf32> to vector<8x8xbf16>
    %109 = vector.extract_strided_slice %28 {offsets = [0, 24], sizes = [8, 8], strides = [1, 1]} : vector<8x32xf32> to vector<8x8xf32>
    %110 = arith.truncf %109 : vector<8x8xf32> to vector<8x8xbf16>
    %111 = vector.extract_strided_slice %29 {offsets = [0, 24], sizes = [8, 8], strides = [1, 1]} : vector<8x32xf32> to vector<8x8xf32>
    %112 = arith.truncf %111 : vector<8x8xf32> to vector<8x8xbf16>
    %cst_38 = arith.constant dense<0.000000e+00> : vector<8x8xf32>
    %113 = tpu.matmul %108, %110, %cst_38 {dimension_numbers = #tpu.dot_dimension_numbers<[1], [1], [0], [0], [0, 0, 1, 0], [], []>} : vector<8x8xbf16>, vector<8x8xbf16>, vector<8x8xf32> -> vector<8x8xf32>
    %114 = arith.addf %113, %30 : vector<8x8xf32>
    %cst_39 = arith.constant dense<0xFF800000> : vector<8xf32>
    %115 = vector.multi_reduction <maximumf>, %114, %cst_39 [1] : vector<8x8xf32> to vector<8xf32>
    %116 = vector.shape_cast %115 : vector<8xf32> to vector<8x1xf32>
    %117 = vector.broadcast %116 : vector<8x1xf32> to vector<8x8xf32>
    %118 = arith.subf %114, %117 : vector<8x8xf32>
    %119 = math.exp %118 : vector<8x8xf32>
    %cst_40 = arith.constant dense<0.000000e+00> : vector<8xf32>
    %120 = vector.multi_reduction <add>, %119, %cst_40 [1] : vector<8x8xf32> to vector<8xf32>
    %121 = vector.shape_cast %120 : vector<8xf32> to vector<8x1xf32>
    %122 = tpu.reciprocal %121 {approx = true} : vector<8x1xf32> -> vector<8x1xf32>
    %123 = vector.broadcast %122 : vector<8x1xf32> to vector<8x8xf32>
    %124 = arith.mulf %119, %123 : vector<8x8xf32>
    %125 = arith.truncf %124 : vector<8x8xf32> to vector<8x8xbf16>
    %cst_41 = arith.constant dense<0.000000e+00> : vector<8x8xf32>
    %126 = tpu.matmul %125, %112, %cst_41 {dimension_numbers = #tpu.dot_dimension_numbers<[1], [0], [0], [1], [0, 0, 1, 1], [], []>} : vector<8x8xbf16>, vector<8x8xbf16>, vector<8x8xf32> -> vector<8x8xf32>
    %127 = arith.truncf %126 : vector<8x8xf32> to vector<8x8xbf16>
    %c3 = arith.constant 3 : index
    %c0_42 = arith.constant 0 : index
    %c0_43 = arith.constant 0 : index
    %128 = vector.load %arg6[%c3, %c0_42, %c0_43] : memref<4x8x32xbf16, #tpu.memory_space<vmem>>, vector<1x8x32xbf16>
    %129 = vector.shape_cast %128 : vector<1x8x32xbf16> to vector<8x32xbf16>
    %cst_44 = arith.constant dense<0.000000e+00> : vector<8x32xf32>
    %130 = tpu.matmul %127, %129, %cst_44 {dimension_numbers = #tpu.dot_dimension_numbers<[1], [0], [0], [1], [0, 0, 1, 1], [], []>} : vector<8x8xbf16>, vector<8x32xbf16>, vector<8x32xf32> -> vector<8x32xf32>
    %131 = arith.addf %106, %130 : vector<8x32xf32>
    %c0_45 = arith.constant 0 : index
    %c0_46 = arith.constant 0 : index
    %132 = vector.load %arg7[%c0_45, %c0_46] : memref<1x32xf32, #tpu.memory_space<vmem>>, vector<1x32xf32>
    %133 = vector.broadcast %132 : vector<1x32xf32> to vector<8x32xf32>
    %134 = arith.addf %131, %133 : vector<8x32xf32>
    %135 = arith.addf %1, %134 : vector<8x32xf32>
    %c0_47 = arith.constant 0 : index
    %c0_48 = arith.constant 0 : index
    %136 = vector.load %arg8[%c0_47, %c0_48] : memref<1x32xf32, #tpu.memory_space<vmem>>, vector<1x32xf32>
    %c0_49 = arith.constant 0 : index
    %c0_50 = arith.constant 0 : index
    %137 = vector.load %arg9[%c0_49, %c0_50] : memref<1x32xf32, #tpu.memory_space<vmem>>, vector<1x32xf32>
    %cst_51 = arith.constant dense<0.000000e+00> : vector<8xf32>
    %138 = vector.multi_reduction <add>, %135, %cst_51 [1] : vector<8x32xf32> to vector<8xf32>
    %139 = vector.shape_cast %138 : vector<8xf32> to vector<8x1xf32>
    %cst_52 = arith.constant 3.200000e+01 : f32
    %140 = vector.broadcast %cst_52 : f32 to vector<8x1xf32>
    %141 = arith.divf %139, %140 : vector<8x1xf32>
    %142 = vector.broadcast %141 : vector<8x1xf32> to vector<8x32xf32>
    %143 = arith.subf %135, %142 : vector<8x32xf32>
    %144 = arith.mulf %143, %143 : vector<8x32xf32>
    %cst_53 = arith.constant dense<0.000000e+00> : vector<8xf32>
    %145 = vector.multi_reduction <add>, %144, %cst_53 [1] : vector<8x32xf32> to vector<8xf32>
    %146 = vector.shape_cast %145 : vector<8xf32> to vector<8x1xf32>
    %cst_54 = arith.constant 3.200000e+01 : f32
    %147 = vector.broadcast %cst_54 : f32 to vector<8x1xf32>
    %148 = arith.divf %146, %147 : vector<8x1xf32>
    %cst_55 = arith.constant 9.99999974E-6 : f32
    %149 = vector.broadcast %cst_55 : f32 to vector<8x1xf32>
    %150 = arith.addf %148, %149 : vector<8x1xf32>
    %151 = math.rsqrt %150 : vector<8x1xf32>
    %152 = vector.broadcast %151 : vector<8x1xf32> to vector<8x32xf32>
    %153 = arith.mulf %143, %152 : vector<8x32xf32>
    %154 = vector.broadcast %136 : vector<1x32xf32> to vector<8x32xf32>
    %155 = arith.mulf %154, %153 : vector<8x32xf32>
    %156 = vector.broadcast %137 : vector<1x32xf32> to vector<8x32xf32>
    %157 = arith.addf %155, %156 : vector<8x32xf32>
    %158 = arith.truncf %157 : vector<8x32xf32> to vector<8x32xbf16>
    %c0_56 = arith.constant 0 : index
    %c0_57 = arith.constant 0 : index
    %159 = vector.load %arg10[%c0_56, %c0_57] : memref<32x128xbf16, #tpu.memory_space<vmem>>, vector<32x128xbf16>
    %cst_58 = arith.constant dense<0.000000e+00> : vector<8x128xf32>
    %160 = tpu.matmul %158, %159, %cst_58 {dimension_numbers = #tpu.dot_dimension_numbers<[1], [0], [0], [1], [0, 0, 1, 1], [], []>} : vector<8x32xbf16>, vector<32x128xbf16>, vector<8x128xf32> -> vector<8x128xf32>
    %c0_59 = arith.constant 0 : index
    %c0_60 = arith.constant 0 : index
    %161 = vector.load %arg11[%c0_59, %c0_60] : memref<1x128xf32, #tpu.memory_space<vmem>>, vector<1x128xf32>
    %162 = vector.broadcast %161 : vector<1x128xf32> to vector<8x128xf32>
    %163 = arith.addf %160, %162 : vector<8x128xf32>
    %cst_61 = arith.constant 5.000000e-01 : f32
    %164 = vector.broadcast %cst_61 : f32 to vector<8x128xf32>
    %165 = arith.mulf %164, %163 : vector<8x128xf32>
    %cst_62 = arith.constant 0.636619746 : f32
    %166 = math.sqrt %cst_62 : f32
    %167 = arith.mulf %163, %163 : vector<8x128xf32>
    %168 = arith.mulf %163, %167 : vector<8x128xf32>
    %cst_63 = arith.constant 4.471500e-02 : f32
    %169 = vector.broadcast %cst_63 : f32 to vector<8x128xf32>
    %170 = arith.mulf %169, %168 : vector<8x128xf32>
    %171 = arith.addf %163, %170 : vector<8x128xf32>
    %172 = vector.broadcast %166 : f32 to vector<8x128xf32>
    %173 = arith.mulf %172, %171 : vector<8x128xf32>
    %174 = math.tanh %173 : vector<8x128xf32>
    %cst_64 = arith.constant 1.000000e+00 : f32
    %175 = vector.broadcast %cst_64 : f32 to vector<8x128xf32>
    %176 = arith.addf %175, %174 : vector<8x128xf32>
    %177 = arith.mulf %165, %176 : vector<8x128xf32>
    %178 = arith.truncf %177 : vector<8x128xf32> to vector<8x128xbf16>
    %c0_65 = arith.constant 0 : index
    %c0_66 = arith.constant 0 : index
    %179 = vector.load %arg12[%c0_65, %c0_66] : memref<128x32xbf16, #tpu.memory_space<vmem>>, vector<128x32xbf16>
    %cst_67 = arith.constant dense<0.000000e+00> : vector<8x32xf32>
    %180 = tpu.matmul %178, %179, %cst_67 {dimension_numbers = #tpu.dot_dimension_numbers<[1], [0], [0], [1], [0, 0, 1, 1], [], []>} : vector<8x128xbf16>, vector<128x32xbf16>, vector<8x32xf32> -> vector<8x32xf32>
    %c0_68 = arith.constant 0 : index
    %c0_69 = arith.constant 0 : index
    %181 = vector.load %arg13[%c0_68, %c0_69] : memref<1x32xf32, #tpu.memory_space<vmem>>, vector<1x32xf32>
    %182 = vector.broadcast %181 : vector<1x32xf32> to vector<8x32xf32>
    %183 = arith.addf %180, %182 : vector<8x32xf32>
    %184 = arith.addf %135, %183 : vector<8x32xf32>
    %c0_70 = arith.constant 0 : index
    %c0_71 = arith.constant 0 : index
    %c0_72 = arith.constant 0 : index
    %185 = vector.load %arg14[%c0_70, %c0_71, %c0_72] : memref<1x8x32xf32, #tpu.memory_space<vmem>>, vector<1x8x32xf32>
    %186 = vector.shape_cast %185 : vector<1x8x32xf32> to vector<8x32xf32>
    %187 = vector.shape_cast %184 : vector<8x32xf32> to vector<1x8x32xf32>
    tpu.vector_store %arg14[%c0_70, %c0_71, %c0_72], %187 {strides = array<i32>} : memref<1x8x32xf32, #tpu.memory_space<vmem>>, vector<1x8x32xf32>,
    return
  }
  func.func @transform_0(%arg0: i32) -> (i32, i32, i32) {
    %c0_i32 = arith.constant 0 : i32
    %c0_i32_0 = arith.constant 0 : i32
    %c0_i32_1 = arith.constant 0 : i32
    return %arg0, %c0_i32, %c0_i32_0 : i32, i32, i32
  }
  func.func @transform_1(%arg0: i32) -> (i32, i32) {
    %c0_i32 = arith.constant 0 : i32
    %c0_i32_0 = arith.constant 0 : i32
    %c0_i32_1 = arith.constant 0 : i32
    return %c0_i32, %c0_i32_0 : i32, i32
  }
  func.func @transform_2(%arg0: i32) -> (i32, i32) {
    %c0_i32 = arith.constant 0 : i32
    %c0_i32_0 = arith.constant 0 : i32
    %c0_i32_1 = arith.constant 0 : i32
    return %c0_i32, %c0_i32_0 : i32, i32
  }
  func.func @transform_3(%arg0: i32) -> (i32, i32) {
    %c0_i32 = arith.constant 0 : i32
    %c0_i32_0 = arith.constant 0 : i32
    %c0_i32_1 = arith.constant 0 : i32
    return %c0_i32, %c0_i32_0 : i32, i32
  }
  func.func @transform_4(%arg0: i32) -> (i32, i32) {
    %c0_i32 = arith.constant 0 : i32
    %c0_i32_0 = arith.constant 0 : i32
    %c0_i32_1 = arith.constant 0 : i32
    return %c0_i32, %c0_i32_0 : i32, i32
  }
  func.func @transform_5(%arg0: i32) -> (i32, i32, i32) {
    %c0_i32 = arith.constant 0 : i32
    %c0_i32_0 = arith.constant 0 : i32
    %c0_i32_1 = arith.constant 0 : i32
    %c0_i32_2 = arith.constant 0 : i32
    return %c0_i32, %c0_i32_0, %c0_i32_1 : i32, i32, i32
  }
  func.func @transform_6(%arg0: i32) -> (i32, i32) {
    %c0_i32 = arith.constant 0 : i32
    %c0_i32_0 = arith.constant 0 : i32
    %c0_i32_1 = arith.constant 0 : i32
    return %c0_i32, %c0_i32_0 : i32, i32
  }
  func.func @transform_7(%arg0: i32) -> (i32, i32) {
    %c0_i32 = arith.constant 0 : i32
    %c0_i32_0 = arith.constant 0 : i32
    %c0_i32_1 = arith.constant 0 : i32
    return %c0_i32, %c0_i32_0 : i32, i32
  }
  func.func @transform_8(%arg0: i32) -> (i32, i32) {
    %c0_i32 = arith.constant 0 : i32
    %c0_i32_0 = arith.constant 0 : i32
    %c0_i32_1 = arith.constant 0 : i32
    return %c0_i32, %c0_i32_0 : i32, i32
  }
  func.func @transform_9(%arg0: i32) -> (i32, i32) {
    %c0_i32 = arith.constant 0 : i32
    %c0_i32_0 = arith.constant 0 : i32
    %c0_i32_1 = arith.constant 0 : i32
    return %c0_i32, %c0_i32_0 : i32, i32
  }
  func.func @transform_10(%arg0: i32) -> (i32, i32) {
    %c0_i32 = arith.constant 0 : i32
    %c0_i32_0 = arith.constant 0 : i32
    %c0_i32_1 = arith.constant 0 : i32
    return %c0_i32, %c0_i32_0 : i32, i32
  }
  func.func @transform_11(%arg0: i32) -> (i32, i32) {
    %c0_i32 = arith.constant 0 : i32
    %c0_i32_0 = arith.constant 0 : i32
    %c0_i32_1 = arith.constant 0 : i32
    return %c0_i32, %c0_i32_0 : i32, i32
  }
  func.func @transform_12(%arg0: i32) -> (i32, i32) {
    %c0_i32 = arith.constant 0 : i32
    %c0_i32_0 = arith.constant 0 : i32
    %c0_i32_1 = arith.constant 0 : i32
    return %c0_i32, %c0_i32_0 : i32, i32
  }
  func.func @transform_13(%arg0: i32) -> (i32, i32, i32) {
    %c0_i32 = arith.constant 0 : i32
    %c0_i32_0 = arith.constant 0 : i32
    %c0_i32_1 = arith.constant 0 : i32
    return %arg0, %c0_i32, %c0_i32_0 : i32, i32, i32
  }
}

</mosaic_0001>

<bundles_post_ra>
// kernel: tpu_custom_call.1
= control target key start
LH: loop header
LB: loop body
LE: loop exit
PB: predicated region body
PF: predicated region fallthrough
CT: control target
= control target key end

     0   :  { %s1620_s0 = inlined_call_operand.vmem [shape: f32[2,8,32], index: 0, kind: input, shape index: {}]   ;;  %s1621_s1 = inlined_call_operand.vmem [shape: f32[8,8], index: 1, kind: input, shape index: {}]   ;;  %s1622_s2 = inlined_call_operand.vmem [shape: f32[1,32], index: 2, kind: input, shape index: {}]   ;;  %s1623_s3 = inlined_call_operand.vmem [shape: f32[1,32], index: 3, kind: input, shape index: {}]   ;;  %s1624_s4 = inlined_call_operand.vmem [shape: bf16[32,96], index: 4, kind: input, shape index: {}]   ;;  %s1625_s5 = inlined_call_operand.vmem [shape: bf16[4,8,32], index: 5, kind: input, shape index: {}]   ;;  %s1626_s6 = inlined_call_operand.vmem [shape: f32[1,32], index: 6, kind: input, shape index: {}]   ;;  %s1627_s7 = inlined_call_operand.vmem [shape: f32[1,32], index: 7, kind: input, shape index: {}]   ;;  %s1628_s8 = inlined_call_operand.vmem [shape: f32[1,32], index: 8, kind: input, shape index: {}]   ;;  %s1629_s9 = inlined_call_operand.vmem [shape: bf16[32,128], index: 9, kind: input, shape index: {}]   ;;  %s1630_s10 = inlined_call_operand.vmem [shape: f32[1,128], index: 10, kind: input, shape index: {}]   ;;  %s1631_s11 = inlined_call_operand.vmem [shape: bf16[128,32], index: 11, kind: input, shape index: {}]   ;;  %s1632_s12 = inlined_call_operand.vmem [shape: f32[1,32], index: 12, kind: input, shape index: {}]   ;;  %s1633_s13 = inlined_call_operand.hbm [shape: f32[2,8,32], index: 13, kind: output, shape index: {}]  }
   0x1   :  { %1634 = sst [smem:[#allocation5_spill]] %s1620_s0 }
   0x2   :  { %1635 = sst [smem:[#allocation6_spill]] %s1621_s1 }
   0x3   :  { %1636 = sst [smem:[#allocation7_spill]] %s1622_s2 }
   0x4   :  { %1637 = sst [smem:[#allocation8_spill]] %s1623_s3 }
   0x5   :  { %18 = vsyncpa [#allocation3], 0 }
   0x6   :  { %20 = vsyncpa [#allocation3 + $0x1], 0  ;;  %s1385_s25 = smov 0   ;;  %s1387_s26 = smov 0  }
   0x7   :  { %s1389_s27 = smov 0   ;;  %s1391_s28 = smov 0  }
   0x8 LB: > { %s1406_s29 = sadd.s32 4294967295, %s1301_s28   ;;  %s1070_s30 = sadd.s32 4294967294, %s1301_s28   ;;  %s1301_s28 = sphi %s1391_s28, %s1647_s28   ;;  %s1297_s27 = sphi %s1389_s27, %s1646_s27   ;;  %s1293_s26 = sphi %s1387_s26, %s1645_s26   ;;  %s1289_s25 = sphi %s1385_s25, %s1644_s25  }
   0x9   : > { %s1410_s14 = sadd.s32 1, %s1301_s28   ;;  %s311_s15 = sadd.s32 1, %s1297_s27 }
   0xa   : > { %s308_s16 = ssub.s32 %s1301_s28, %s1410_s14  ;;  %p321_p0 = scmp.ne.s32.totalorder %s1297_s27, %s1293_s26 }
   0xb   : > { %p309_p1 = scmp.eq.s32.totalorder %s308_s16, 0  ;;  %p322_p2 = scmp.eq.s32.totalorder %s1406_s29, 1 }
   0xc   : > { %p327_p3 = scmp.ne.s32.totalorder %s1293_s26, %s1289_s25  ;;  %p328_p4 = scmp.eq.s32.totalorder %s1070_s30, 1 }
   0xd   : > { %s1421_s17 = scalar_select %p309_p1, %s1297_s27, %s311_s15  }
   0xe   : > { %p1423_p5 = por %p322_p2, %p321_p0  ;;  %p1427_p6 = por %p328_p4, %p327_p3 }
   0xf   : > { %p1073_p7 = scmp.ge.s32.totalorder %s1301_s28, 1  ;;  %p389_p8 = scmp.lt.s32.totalorder %s1301_s28, 3 }
  0x11   : > { %p390_p9 = pnand %p1073_p7, %p389_p8 }
  0x12   : > { %p432_p10 = scmp.lt.s32.totalorder (!%p390_p9), %s1406_s29, 1  ;;  %s1640_s0 = sld [smem:[#allocation5_spill]] (!%p390_p9) }
  0x13   : > { %393 = sbr.rel (%p390_p9) target bundleno = 2302 (0x8fe), region = 72  ;;  %s1641_s2 = sld [smem:[#allocation7_spill]] (!%p390_p9) }
  0x14   : > { %s1642_s3 = sld [smem:[#allocation8_spill]] (!%p390_p9)  ;;  %s1304_s30 = smov (!%p390_p9), 88  }
  0x15   : > { %s1305_s15 = smov (!%p390_p9), 96   ;;  %s1306_s16 = smov (!%p390_p9), 80  }
  0x16   : > { %s1643_s1 = sld [smem:[#allocation6_spill]] (!%p390_p9)  ;;  %s1308_s23 = smov (!%p390_p9), 64  }
  0x17   : > { %s1313_s22 = smov (!%p390_p9), 56  }
  0x18   : > { %s433_s20 = scalar_select %p432_p10, %s1406_s29, 1  ;;  %vm440_vm0 = vcmask 261120   ;;  %v1303_v2 = vmov 32.0   ;;  %v1146_v14 = vld [vmem:[%s1624_s4 + $0x8] sm:$0xff]  ;;  %v1145_v15 = vld [vmem:[%s1624_s4] sm:$0xff]  ;;  %vm516_vm5 = vcmask 64512  }
  0x19   : > { %1215 = vrcp.f32 %v1303_v2  ;;  %504 = vmatpush.bf16.msra.mxu0 %v1146_v14  ;;  %v1208_v25 = vld [vmem:[%s1641_s2] ss:$0 sm:$0xff]  ;;  %vm553_vm6 = vcmask 1043456  }
  0x1a   : > { %s1075_s21 = sshll.u32 %s433_s20, 3  ;;  %v1209_v28 = vld [vmem:[%s1642_s3] ss:$0 sm:$0xff]  ;;  %s1307_s20 = smov 112  }
  0x1b   : > { %s435_s24 = scalar_lea.vmem %s1640_s0, %s1075_s21  ;;  %v571_v51 = vld [vmem:[%s1625_s5] sm:$0xf]  ;;  %s1312_s21 = smov 40  }
  0x1c   : > { %v1438_v0 = vld [vmem:[%s435_s24] sm:$0xff]  ;;  %s1309_s24 = smov 120   ;;  %v654_v52 = vsel %vm553_vm6, %v571_v51, 0  ;;  %v1094_v51 = vld [vmem:[%s1625_s5 + $0x8] sm:$0xf]  ;;  %s429_s0 = sand.u32 1, %s1293_s26  }
  0x1d   : > { %v441_v1 = vsel %vm440_vm0, %v1438_v0, 0.0  ;;  %505 = vmatpush.bf16.msra.mxu0 %v1145_v15  ;;  %v1475_v41 = vld [vmem:[%s1643_s1] sm:$0xff]  ;;  %663 = vmatpush.bf16.msra.mxu1 %v654_v52  ;;  %v732_v52 = vsel %vm553_vm6, %v1094_v51, 0  ;;  %s1074_s1 = sshll.u32 %s429_s0, 3 }
  0x1e   : > { %442 = vadd.xlane.f32.xlu0 %v441_v1 }
  0x1f   : > { %v1216_v3 = vpop.eup %1215 }
  0x20   : > { %v445_v4 = vmul.f32 32.0, %v1216_v3  ;;  %vm449_vm1 = vweird.f32 %v1216_v3 }
  0x22   : > { %v446_v5 = vsub.f32 1.0, %v445_v4 }
  0x24   : > { %v447_v6 = vmul.f32 %v1216_v3, %v446_v5 }
  0x26   : > { %v448_v7 = vadd.f32 %v1216_v3, %v447_v6 }
  0x28   : > { %v1442_v8 = vsel %vm449_vm1, %v1216_v3, %v448_v7 }
  0x91   : > { %v443_v9 = vpop.xlane.xlu0 %442 }
  0x92   : > { %v451_v10 = vmul.f32 %v1442_v8, %v443_v9 }
  0x94   : > { %v452_v11 = vsub.f32 %v1438_v0, %v451_v10 }
  0x96   : > { %v453_v12 = vmul.f32 %v452_v11, %v452_v11 }
  0x98   : > { %v454_v13 = vsel %vm440_vm0, %v453_v12, 0.0 }
  0x99   : > { %455 = vadd.xlane.f32.xlu0 %v454_v13 }
 0x10c   : > { %v456_v16 = vpop.xlane.xlu0 %455 }
 0x10d   : > { %v457_v17 = vmul.f32 %v456_v16, %v1442_v8 }
 0x10f   : > { %v458_v18 = vadd.f32 1e-05, %v457_v17 }
 0x111   : > { %1217 = vrsqrt.f32 %v458_v18  ;;  %vm465_vm3 = vweird.f32 %v458_v18 }
 0x117   : > { %v1218_v19 = vpop.eup %1217 }
 0x118   : > { %v460_v20 = vmul.f32 %v1218_v19, %v458_v18  ;;  %vm466_vm2 = vweird.f32 %v1218_v19 }
 0x119   : > { %vm467_vm4 = vmor %vm465_vm3, %vm466_vm2 }
 0x11a   : > { %v461_v21 = vmul.f32 %v1218_v19, %v460_v20 }
 0x11c   : > { %v462_v22 = vmul.f32 0.5, %v461_v21 }
 0x11e   : > { %v463_v23 = vsub.f32 1.5, %v462_v22 }
 0x120   : > { %v464_v24 = vmul.f32 %v1218_v19, %v463_v23 }
 0x122   : > { %v468_v26 = vsel %vm467_vm4, %v1218_v19, %v464_v24 }
 0x123   : > { %v469_v27 = vmul.f32 %v468_v26, %v452_v11 }
 0x125   : > { %v473_v29 = vmul.f32 %v1208_v25, %v469_v27 }
 0x127   : > { %v477_v30 = vadd.f32 %v1209_v28, %v473_v29 }
 0x129   : > { %v478_v31 = vpack.c.bf16 %v477_v30, %v477_v30 }
 0x12b   : > { %1084 = vmatmul.msk.bf16.vlgmr.msra.gmra.mxu0 %vm440_vm0, %v478_v31 }
 0x1a8   : > { %v507_v32 = vpop.f32.mrf.mxu0 }
 0x1a9   : > { %v1461_v33 = vpack.c.bf16 %v507_v32, %v507_v32 }
 0x1ab   : > { %574 = vrot.lane.b32.xlu0 %v1461_v33, %s1304_s30  ;;  %514 = vrot.lane.b32.xlu1 %v1461_v33, %s1305_s15  ;;  %s1310_s30 = smov 72   ;;  %s1311_s15 = smov 104  }
 0x1b0   : > { %v509_v34 = vpop.f32.mrf.mxu0 }
 0x1b3   : > { %671 = vrot.lane.b32.xlu0 %v1461_v33, %s1306_s16 }
 0x1bb   : > { %669 = vrot.lane.b32.xlu0 %v1461_v33, %s1307_s20 }
 0x21d   : > { %v575_v35 = vpop.permute.xlu0 %574  ;;  %v515_v36 = vpop.permute.xlu1 %514 }
 0x21e   : > { %v521_v37 = vsel %vm516_vm5, %v515_v36, 0  ;;  %v580_v38 = vsel %vm516_vm5, %v575_v35, 0 }
 0x21f   : > { %530 = vmatpush.bf16.xpose.msra.mxu3 %v521_v37 }
 0x225   : > { %v672_v39 = vpop.permute.xlu0 %671 }
 0x226   : > { %v677_v40 = vsel %vm516_vm5, %v672_v39, 0  ;;  %1085 = vmatmul.msk.bf16.vlgmr.msra.gmra.mxu3 %vm516_vm5, %v1461_v33 }
 0x227   : > { %589 = vmatpush.bf16.xpose.msrb.mxu3 %v580_v38 }
 0x22d   : > { %v670_v62 = vpop.permute.xlu0 %669 }
 0x22f   : > { %686 = vmatpush.bf16.xpose.msra.mxu3 %v677_v40 }
 0x2a9   : > { %v532_v42 = vpop.f32.mrf.mxu3 }
 0x2aa   : > { %v533_v43 = vadd.f32 %v532_v42, %v1475_v41 }
 0x2ac   : > { %v536_v44 = vsel %vm516_vm5, %v533_v43, -inf }
 0x2ad   : > { %537 = vmax.xlane.f32.xlu1 %v536_v44 }
 0x2b1   : > { %v534_v45 = vpop.f32.mrf.mxu3 }
 0x320   : > { %v538_v46 = vpop.xlane.xlu1 %537 }
 0x321   : > { %v539_v47 = vsub.f32 %v533_v43, %v538_v46 }
 0x323   : > { %v540_v48 = vmul.f32 1.442695, %v539_v47 }
 0x325   : > { %1219 = vpow2.f32 %v540_v48  ;;  %v1089_v48 = vld [vmem:[%s1625_s5 + $0x4] sm:$0xf] }
 0x32b   : > { %v1220_v49 = vpop.eup %1219 }
 0x32c   : > { %v542_v50 = vsel %vm516_vm5, %v1220_v49, 0.0 }
 0x32d   : > { %543 = vadd.xlane.f32.xlu2 %v542_v50 }
 0x345   : > { %548 = vrot.lane.b32.xlu2 %v1461_v33, %s1308_s23  ;;  %s1314_s23 = smov 48  }
 0x34d   : > { %572 = vrot.lane.b32.xlu2 %v1461_v33, %s1309_s24  ;;  %s1142_s24 = sshll.u32 %s1406_s29, 3  ;;  %s996_s29 = scalar_lea.sflag [#allocation3], %s429_s0 }
 0x355   : > { %750 = vrot.lane.b32.xlu2 %v1461_v33, %s1310_s30 }
 0x35d   : > { %748 = vrot.lane.b32.xlu2 %v1461_v33, %s1311_s15 }
 0x3a0   : > { %v544_v53 = vpop.xlane.xlu2 %543 }
 0x3a1   : > { %1221 = vrcp.f32 %v544_v53 }
 0x3a7   : > { %v1222_v54 = vpop.eup %1221 }
 0x3a8   : > { %v549_v55 = vpop.permute.xlu2 %548  ;;  %v546_v56 = vmul.f32 %v1222_v54, %v1220_v49  ;;  %v635_v49 = vsel %vm553_vm6, %v1089_v48, 0 }
 0x3a9   : > { %v555_v57 = vsel %vm553_vm6, %v549_v55, 0  ;;  %644 = vmatpush.bf16.msrb.mxu0 %v635_v49 }
 0x3aa   : > { %564 = vmatpush.bf16.msra.mxu2 %v555_v57  ;;  %v547_v58 = vpack.c.bf16 %v546_v56, %v546_v56  ;;  %v1098_v56 = vld [vmem:[%s1625_s5 + $0xc] sm:$0xf] }
 0x3ab   : > { %v811_v57 = vsel %vm553_vm6, %v1098_v56, 0 }
 0x3ad   : > { %1086 = vmatmul.msk.bf16.vlgmr.msra.gmra.mxu2 %vm516_vm5, %v547_v58  ;;  %741 = vmatpush.bf16.msra.mxu0 %v732_v52 }
 0x3b0   : > { %v573_v59 = vpop.permute.xlu2 %572 }
 0x3b1   : > { %1087 = vmatmul.msk.bf16.vlgmr.msrb.gmra.mxu3 %vm516_vm5, %v573_v59 }
 0x3b8   : > { %v751_v60 = vpop.permute.xlu2 %750 }
 0x3b9   : > { %v756_v61 = vsel %vm516_vm5, %v751_v60, 0 }
 0x3ba   : > { %765 = vmatpush.bf16.xpose.msrb.mxu1 %v756_v61 }
 0x3c0   : > { %v749_v7 = vpop.permute.xlu2 %748 }
 0x3c1   : > { %1092 = vmatmul.msk.bf16.vlgmr.msra.gmra.mxu3 %vm516_vm5, %v670_v62 }
 0x430   : > { %v566_v63 = vpop.f32.mrf.mxu2 }
 0x431   : > { %v570_v1 = vpack.c.bf16 %v566_v63, %v566_v63 }
 0x433   : > { %1091 = vmatmul.msk.bf16.vlgmr.msra.gmra.mxu1 %vm516_vm5, %v570_v1 }
 0x434   : > { %v591_v2 = vpop.f32.mrf.mxu3 }
 0x435   : > { %v592_v3 = vadd.f32 %v591_v2, %v1475_v41 }
 0x437   : > { %v595_v4 = vsel %vm516_vm5, %v592_v3, -inf }
 0x438   : > { %v568_v5 = vpop.f32.mrf.mxu2  ;;  %596 = vmax.xlane.f32.xlu1 %v595_v4 }
 0x43c   : > { %v593_v6 = vpop.f32.mrf.mxu3 }
 0x443   : > { %1096 = vmatmul.msk.bf16.vlgmr.msrb.gmra.mxu1 %vm516_vm5, %v749_v7 }
 0x444   : > { %v688_v9 = vpop.f32.mrf.mxu3 }
 0x445   : > { %v689_v10 = vadd.f32 %v688_v9, %v1475_v41 }
 0x447   : > { %v692_v11 = vsel %vm516_vm5, %v689_v10, -inf }
 0x448   : > { %693 = vmax.xlane.f32.xlu2 %v692_v11  ;;  %v1210_v11 = vld [vmem:[%s1626_s6] ss:$0 sm:$0xff] }
 0x44c   : > { %v690_v12 = vpop.f32.mrf.mxu3 }
 0x460   : > { %783 = vrot.lane.b32.xlu2 %v1461_v33, %s1312_s21  ;;  %s1006_s21 = scalar_lea.hbm %s1633_s13, %s1142_s24 }
 0x461   : > { %s1010_s2 = sshll.u32 %s1006_s21, 4  ;;  %s1011_s2 = int_to_ptr.hbm [resolvable:$true] %s1010_s2 }
 0x462   : > { %s1253_s3 = sshra.s32 %s1011_s2, 4  ;;  %s1254_s3 = int_to_ptr.hbm [resolvable:$true] %s1253_s3 }
 0x463   : > { %s1255_s30 = scalar_lea.hbm %s1254_s3, 8  ;;  %p1260_p0 = scmp.lt.s32.totalorder %s1254_s3, %s1633_s13 }
 0x464   : > { %p1256_p11 = scmp.ne.s32.totalorder %s1254_s3, %s1255_s30 }
 0x466   : > { %p1257_p12 = pnand %p1256_p11, %p1423_p5 }
 0x468   : > { %p1258_p13 = pneg %p1257_p12 }
 0x4ab   : > { %v597_v13 = vpop.xlane.xlu1 %596 }
 0x4ac   : > { %v598_v14 = vsub.f32 %v592_v3, %v597_v13 }
 0x4ae   : > { %v599_v15 = vmul.f32 1.442695, %v598_v14 }
 0x4b0   : > { %1223 = vpow2.f32 %v599_v15  ;;  %v1500_v16 = vpop.f32.mrf.mxu1 }
 0x4b6   : > { %v1224_v17 = vpop.eup %1223 }
 0x4b7   : > { %v601_v18 = vsel %vm516_vm5, %v1224_v17, 0.0 }
 0x4b8   : > { %v667_v19 = vpop.f32.mrf.mxu1  ;;  %602 = vadd.xlane.f32.xlu1 %v601_v18 }
 0x4bb   : > { %v694_v20 = vpop.xlane.xlu2 %693 }
 0x4bc   : > { %v695_v21 = vsub.f32 %v689_v10, %v694_v20 }
 0x4be   : > { %v696_v22 = vmul.f32 1.442695, %v695_v21 }
 0x4c0   : > { %v767_v23 = vpop.f32.mrf.mxu1  ;;  %1225 = vpow2.f32 %v696_v22 }
 0x4c1   : > { %v768_v24 = vadd.f32 %v767_v23, %v1475_v41  ;;  %v1148_v23 = vld [vmem:[%s1629_s9 + $0x8] sm:$0xff] }
 0x4c3   : > { %v784_v25 = vpop.permute.xlu2 %783  ;;  %v771_v26 = vsel %vm516_vm5, %v768_v24, -inf }
 0x4c4   : > { %v789_v27 = vsel %vm553_vm6, %v784_v25, 0  ;;  %772 = vmax.xlane.f32.xlu0 %v771_v26 }
 0x4c5   : > { %798 = vmatpush.bf16.msrb.mxu3 %v789_v27  ;;  %v1155_v27 = vld [vmem:[%s1631_s11 + $0x30] sm:$0xff] }
 0x4c6   : > { %v1226_v28 = vpop.eup %1225 }
 0x4c7   : > { %v698_v30 = vsel %vm516_vm5, %v1226_v28, 0.0 }
 0x4c8   : > { %v769_v29 = vpop.f32.mrf.mxu1 }
 0x4cc   : > { %699 = vadd.xlane.f32.xlu0 %v698_v30 }
 0x4d1   : > { %607 = vrot.lane.b32.xlu1 %v1461_v33, %s1313_s22  ;;  %s431_s22 = scalar_lea.vmem [#allocation2], %s1074_s1  ;;  %s1259_s1 = scalar_lea.hbm %s1633_s13, 16 }
 0x4d2   : > { %p1261_p1 = scmp.lt.s32.totalorder %s1259_s1, %s1255_s30 }
 0x4d4   : > { %p1262_p2 = por %p1261_p1, %p1260_p0 }
 0x4d6   : > { %p1263_p3 = pnand %p1262_p2, %p1258_p13 }
 0x4e0   : > { %704 = vrot.lane.b32.xlu0 %v1461_v33, %s1314_s23  ;;  %s1008_s23 = sshll.u32 %s431_s22, 4  ;;  %s1009_s23 = int_to_ptr.vmem [resolvable:$true] %s1008_s23 }
 0x52b   : > { %v603_v31 = vpop.xlane.xlu1 %602 }
 0x52c   : > { %1227 = vrcp.f32 %v603_v31 }
 0x532   : > { %v1228_v36 = vpop.eup %1227 }
 0x533   : > { %v605_v38 = vmul.f32 %v1228_v36, %v1224_v17 }
 0x535   : > { %v606_v43 = vpack.c.bf16 %v605_v38, %v605_v38  ;;  %v1212_v38 = vld [vmem:[%s1628_s8] ss:$0 sm:$0xff] }
 0x537   : > { %v773_v32 = vpop.xlane.xlu0 %772 }
 0x538   : > { %v774_v34 = vsub.f32 %v768_v24, %v773_v32  ;;  %v1156_v24 = vld [vmem:[%s1631_s11 + $0x38] sm:$0xff] }
 0x539   : > { %980 = vmatpush.bf16.msra.mxu1 %v1156_v24 }
 0x53a   : > { %v775_v35 = vmul.f32 1.442695, %v774_v34 }
 0x53c   : > { %1229 = vpow2.f32 %v775_v35 }
 0x53d   : > { %981 = vmatpush.bf16.msra.mxu1 %v1155_v27 }
 0x53f   : > { %v700_v42 = vpop.xlane.xlu0 %699 }
 0x540   : > { %1231 = vrcp.f32 %v700_v42  ;;  %v1154_v42 = vld [vmem:[%s1631_s11 + $0x28] sm:$0xff] }
 0x541   : > { %982 = vmatpush.bf16.msra.mxu1 %v1154_v42 }
 0x542   : > { %v1230_v37 = vpop.eup %1229 }
 0x543   : > { %v608_v39 = vpop.permute.xlu1 %607  ;;  %v777_v40 = vsel %vm516_vm5, %v1230_v37, 0.0 }
 0x544   : > { %778 = vadd.xlane.f32.xlu1 %v777_v40  ;;  %v613_v41 = vsel %vm553_vm6, %v608_v39, 0 }
 0x545   : > { %622 = vmatpush.bf16.msrb.mxu2 %v613_v41 }
 0x546   : > { %v1232_v33 = vpop.eup %1231 }
 0x547   : > { %v702_v44 = vmul.f32 %v1232_v33, %v1226_v28  ;;  %v1152_v33 = vld [vmem:[%s1631_s11 + $0x18] sm:$0xff] }
 0x548   : > { %1088 = vmatmul.msk.bf16.vlgmr.msrb.gmra.mxu2 %vm516_vm5, %v606_v43  ;;  %v1153_v43 = vld [vmem:[%s1631_s11 + $0x20] sm:$0xff] }
 0x549   : > { %v703_v47 = vpack.c.bf16 %v702_v44, %v702_v44  ;;  %983 = vmatpush.bf16.msra.mxu1 %v1153_v43  ;;  %v1151_v44 = vld [vmem:[%s1631_s11 + $0x10] sm:$0xff] }
 0x54d   : > { %984 = vmatpush.bf16.msra.mxu1 %v1152_v33 }
 0x551   : > { %985 = vmatpush.bf16.msra.mxu1 %v1151_v44 }
 0x552   : > { %v705_v45 = vpop.permute.xlu0 %704 }
 0x553   : > { %v710_v46 = vsel %vm553_vm6, %v705_v45, 0  ;;  %v1150_v45 = vld [vmem:[%s1631_s11 + $0x8] sm:$0xff] }
 0x554   : > { %719 = vmatpush.bf16.msra.mxu2 %v710_v46  ;;  %v1149_v46 = vld [vmem:[%s1631_s11] sm:$0xff] }
 0x555   : > { %986 = vmatpush.bf16.msra.mxu1 %v1150_v45 }
 0x558   : > { %1093 = vmatmul.msk.bf16.vlgmr.msra.gmra.mxu2 %vm516_vm5, %v703_v47  ;;  %v1213_v47 = vld [vmem:[%s1630_s10] ss:$0 sm:$0xff] }
 0x559   : > { %820 = vmatpush.bf16.msrb.mxu2 %v811_v57  ;;  %987 = vmatpush.bf16.msra.mxu1 %v1149_v46 }
 0x5b7   : > { %v779_v50 = vpop.xlane.xlu1 %778 }
 0x5b8   : > { %1233 = vrcp.f32 %v779_v50 }
 0x5be   : > { %v1234_v53 = vpop.eup %1233 }
 0x5bf   : > { %v781_v54 = vmul.f32 %v1234_v53, %v1230_v37 }
 0x5c1   : > { %v782_v55 = vpack.c.bf16 %v781_v54, %v781_v54 }
 0x5c3   : > { %1097 = vmatmul.msk.bf16.vlgmr.msrb.gmra.mxu3 %vm516_vm5, %v782_v55 }
 0x5cb   : > { %v624_v58 = vpop.f32.mrf.mxu2 }
 0x5cc   : > { %v628_v59 = vpack.c.bf16 %v624_v58, %v624_v58 }
 0x5ce   : > { %1090 = vmatmul.msk.bf16.vlgmr.msrb.gmra.mxu0 %vm516_vm5, %v628_v59 }
 0x5cf   : > { %895 = vmatpush.bf16.msrb.mxu0 %v1148_v23 }
 0x5d3   : > { %v626_v60 = vpop.f32.mrf.mxu2 }
 0x5db   : > { %v721_v61 = vpop.f32.mrf.mxu2 }
 0x5dc   : > { %v725_v62 = vpack.c.bf16 %v721_v61, %v721_v61  ;;  %v1214_v61 = vld [vmem:[%s1632_s12] ss:$0 sm:$0xff] }
 0x5de   : > { %1095 = vmatmul.msk.bf16.vlgmr.msra.gmra.mxu0 %vm516_vm5, %v725_v62 }
 0x5e3   : > { %v723_v63 = vpop.f32.mrf.mxu2 }
 0x646   : > { %v800_v1 = vpop.f32.mrf.mxu3 }
 0x647   : > { %v804_v2 = vpack.c.bf16 %v800_v1, %v800_v1 }
 0x649   : > { %1099 = vmatmul.msk.bf16.vlgmr.msrb.gmra.mxu2 %vm516_vm5, %v804_v2 }
 0x64b   : > { %v646_v3 = vpop.f32.mrf.mxu0 }
 0x64c   : > { %v666_v6 = vadd.f32 %v1500_v16, %v646_v3 }
 0x64e   : > { %v802_v4 = vpop.f32.mrf.mxu3 }
 0x653   : > { %v648_v5 = vpop.f32.mrf.mxu0 }
 0x65b   : > { %v743_v7 = vpop.f32.mrf.mxu0 }
 0x65c   : > { %v747_v9 = vadd.f32 %v743_v7, %v666_v6 }
 0x663   : > { %v745_v10 = vpop.f32.mrf.mxu0 }
 0x6cc   : > { %v822_v12 = vpop.f32.mrf.mxu2 }
 0x6cd   : > { %v826_v13 = vadd.f32 %v822_v12, %v747_v9 }
 0x6cf   : > { %v831_v14 = vadd.f32 %v1210_v11, %v826_v13 }
 0x6d1   : > { %v1535_v15 = vadd.f32 %v831_v14, %v1438_v0  ;;  %v1147_v0 = vld [vmem:[%s1629_s9] sm:$0xff] }
 0x6d2   : > { %896 = vmatpush.bf16.msrb.mxu0 %v1147_v0 }
 0x6d3   : > { %v835_v17 = vsel %vm440_vm0, %v1535_v15, 0.0 }
 0x6d4   : > { %v824_v18 = vpop.f32.mrf.mxu2  ;;  %836 = vadd.xlane.f32.xlu2 %v835_v17 }
 0x747   : > { %v837_v19 = vpop.xlane.xlu2 %836 }
 0x748   : > { %v838_v16 = vmul.f32 %v837_v19, %v1442_v8 }
 0x74a   : > { %v839_v20 = vsub.f32 %v1535_v15, %v838_v16 }
 0x74c   : > { %v840_v21 = vmul.f32 %v839_v20, %v839_v20 }
 0x74e   : > { %v841_v22 = vsel %vm440_vm0, %v840_v21, 0.0 }
 0x74f   : > { %842 = vadd.xlane.f32.xlu0 %v841_v22 }
 0x7c2   : > { %v843_v25 = vpop.xlane.xlu0 %842 }
 0x7c3   : > { %v844_v26 = vmul.f32 %v843_v25, %v1442_v8  ;;  %v1211_v8 = vld [vmem:[%s1627_s7] ss:$0 sm:$0xff] }
 0x7c5   : > { %v845_v28 = vadd.f32 1e-05, %v844_v26 }
 0x7c7   : > { %1235 = vrsqrt.f32 %v845_v28  ;;  %vm852_vm8 = vweird.f32 %v845_v28 }
 0x7cd   : > { %v1236_v29 = vpop.eup %1235 }
 0x7ce   : > { %v847_v30 = vmul.f32 %v1236_v29, %v845_v28  ;;  %vm853_vm7 = vweird.f32 %v1236_v29 }
 0x7cf   : > { %vm854_vm9 = vmor %vm852_vm8, %vm853_vm7 }
 0x7d0   : > { %v848_v31 = vmul.f32 %v1236_v29, %v847_v30 }
 0x7d2   : > { %v849_v32 = vmul.f32 0.5, %v848_v31 }
 0x7d4   : > { %v850_v34 = vsub.f32 1.5, %v849_v32 }
 0x7d6   : > { %v851_v35 = vmul.f32 %v1236_v29, %v850_v34 }
 0x7d8   : > { %v855_v36 = vsel %vm854_vm9, %v1236_v29, %v851_v35 }
 0x7d9   : > { %v856_v37 = vmul.f32 %v855_v36, %v839_v20 }
 0x7db   : > { %v860_v39 = vmul.f32 %v1211_v8, %v856_v37 }
 0x7dd   : > { %v864_v40 = vadd.f32 %v1212_v38, %v860_v39 }
 0x7df   : > { %v865_v41 = vpack.c.bf16 %v864_v40, %v864_v40 }
 0x7e1   : > { %1108 = vmatmul.msk.bf16.vlgmr.msrb.gmra.mxu0 %vm440_vm0, %v865_v41 }
 0x85e   : > { %v898_v48 = vpop.f32.mrf.mxu0 }
 0x85f   : > { %v899_v49 = vadd.f32 %v1213_v47, %v898_v48 }
 0x861   : > { %v903_v50 = vmul.f32 %v899_v49, %v899_v49  ;;  %v902_v57 = vmul.f32 0.5, %v899_v49 }
 0x863   : > { %v904_v51 = vmul.f32 %v903_v50, %v899_v49 }
 0x865   : > { %v905_v52 = vmul.f32 0.044715, %v904_v51 }
 0x866   : > { %v900_v53 = vpop.f32.mrf.mxu0 }
 0x867   : > { %v906_v54 = vadd.f32 %v905_v52, %v899_v49 }
 0x869   : > { %v907_v55 = vmul.f32 0.7978845, %v906_v54 }
 0x86b   : > { %1237 = vtanh.f32 %v907_v55 }
 0x871   : > { %v1238_v56 = vpop.eup %1237 }
 0x872   : > { %v909_v58 = vadd.f32 1.0, %v1238_v56 }
 0x874   : > { %v910_v59 = vmul.f32 %v909_v58, %v902_v57 }
 0x876   : > { %v911_v60 = vpack.c.bf16 %v910_v59, %v910_v59 }
 0x878   : > { %988 = vmatmul.bf16.vlgmr.msra.gmra.mxu1 %v911_v60 }
 0x8f5   : > { %v989_v62 = vpop.f32.mrf.mxu1 }
 0x8f6   : > { %v990_v63 = vadd.f32 %v1214_v61, %v989_v62 }
 0x8f8   : > { %v993_v1 = vadd.f32 %v990_v63, %v1535_v15 }
 0x8fa   : > { %994 = vst.msk [vmem:[%s431_s22] sm:$0xff] %vm440_vm0, %v993_v1 }
 0x8fb   : > { %1266 = shalt.err (!%p1263_p3)
}
 0x8fc   : > { %1157 = dma.vmem_to_hbm [thread:$0]  (%p1423_p5), %s1009_s23, 128, %s1011_s2, %s996_s29  }
 0x8fd   : > { %v991_v2 = vpop.f32.mrf.mxu1 }
 0x8fe PF: > { %p1163_p4 = scmp.ge.s32.totalorder %s1301_s28, 2  ;;  %s1022_s0 = sand.u32 1, %s1289_s25  }
 0x8ff   : > { %s1023_s21 = scalar_lea.sflag [#allocation3], %s1022_s0 }
 0x900   : > { %p1160_p7 = pnand %p1163_p4, %p1427_p6 }
 0x902   : > { %p1161_p8 = pneg %p1160_p7 }
 0x904   : > { %1284 = dma.done.wait (%p1161_p8), %s1023_s21, 128  }
 0x905   : > { %1286 = vsyncadd (%p1161_p8), %s1023_s21, 4294967168  ;;  %p23_p9 = scmp.ge.s32.totalorder %s1410_s14, 4   ;;  %s1644_s25 = smov %s1293_s26 }
 0x906   : > { %s1645_s26 = smov %s1297_s27  ;;  %s1646_s27 = smov %s1421_s17 }
 0x907   : > { %s1647_s28 = smov %s1410_s14  ;;  %25 = sbr.rel (!%p23_p9) target bundleno = 8 (0x8), region = 110 }
 0x90c   :  { %1029 = vsyncpa [#allocation3], 1 }
 0x90d   :  { %1031 = vsyncpa [#allocation3 + $0x1], 1 }

</bundles_post_ra>
